<compile_context>
chip_gen: v7x
topology: tpu7x:2x2x1
jax: 0.10.0
libtpu: 0.0.40
codegen_flags: <defaults>
</compile_context>

<pallas_src>
import functools

import jax
import jax.numpy as jnp
from jax.experimental import pallas as pl
from jax.experimental.pallas import tpu as pltpu


def _branch(x_ref, w_ref, g_ref, beta_ref, out_ref, *,
            B, Lp, Lout, Hp, F, window, eps):
    """conv (one wide MXU matmul) + BN(train) + maxpool + ReLU; single lane-dense store."""
    n = float(B * Lout)

    # ---- Conv2d: all `window` taps stacked on the lane axis -> ONE MXU matmul. ----
    x = x_ref[...].astype(jnp.bfloat16)                      # (B*Lp, V)
    w = w_ref[...].astype(jnp.bfloat16)                      # (V, window*F)
    p = jnp.dot(x, w, preferred_element_type=jnp.float32)    # (B*Lp, window*F)

    # conv[b, l, :] = sum_kh p[b*Lp + l + kh, kh*F:(kh+1)*F];  lane slices 128-aligned.
    conv_blocks = []
    csum = jnp.zeros((1, F), jnp.float32)
    for b in range(B):
        base = b * Lp
        cb = p[base:base + Lout, 0:F]
        for kh in range(1, window):
            cb = cb + p[base + kh:base + kh + Lout, kh * F:(kh + 1) * F]
        conv_blocks.append(cb)                               # (Lout, F)
        csum = csum + jnp.sum(cb, axis=0, keepdims=True)

    # ---- BatchNorm2d, training mode: biased batch stats over (N, H, W) per channel. ----
    mean = csum / n                                          # (1, F)
    d_blocks = []
    ssum = jnp.zeros((1, F), jnp.float32)
    for cb in conv_blocks:
        db = cb - mean
        d_blocks.append(db)
        ssum = ssum + jnp.sum(db * db, axis=0, keepdims=True)
    scale = jax.lax.rsqrt(ssum / n + eps) * g_ref[...]       # (1, F)
    beta = beta_ref[...]                                     # (1, F)

    # ---- MaxPool2d((window,1), stride (window,1), pad (1,0)). ----
    # PyTorch pads with -inf, so out-of-range rows never win -> just drop them.
    # ReLU commutes with max, so it is applied once after pooling.
    pooled_rows = []
    for b in range(B):
        yb = d_blocks[b] * scale + beta                      # BN output, (Lout, F)
        for i in range(Hp):
            rows = [r for r in range(i * window - 1, i * window - 1 + window)
                    if 0 <= r < Lout]
            v = yb[rows[0]:rows[0] + 1, :]                   # (1, F)
            for r in rows[1:]:
                v = jnp.maximum(v, yb[r:r + 1, :])
            pooled_rows.append(v)
    pooled = jnp.concatenate(pooled_rows, axis=0)            # (B*Hp, F)
    out_ref[...] = jnp.maximum(pooled, 0.0)                  # ReLU + single store


def _fused_kernel(xr_ref, wr_ref, gr_ref, br_ref,
                  xq_ref, wq_ref, gq_ref, bq_ref,
                  outr_ref, outq_ref, *, B, window, F, r_dims, q_dims, eps=1e-5):
    Lp_r, Lout_r, Hp_r = r_dims
    Lp_q, Lout_q, Hp_q = q_dims
    _branch(xr_ref, wr_ref, gr_ref, br_ref, outr_ref,
            B=B, Lp=Lp_r, Lout=Lout_r, Hp=Hp_r, F=F, window=window, eps=eps)
    _branch(xq_ref, wq_ref, gq_ref, bq_ref, outq_ref,
            B=B, Lp=Lp_q, Lout=Lout_q, Hp=Hp_q, F=F, window=window, eps=eps)


def discriminator_cnn_forward(query, response, params, window=2):
    B, Lq, Vq = query.shape
    _, Lr, Vr = response.shape
    F = params["response"]["w"].shape[-1]

    def dims(L):
        Lp = L + 2                                  # Conv2d padding=[1, 0] on the seq dim
        Lout = Lp - window + 1                      # conv output height (W_out == 1)
        Hp = (Lout + 2 - window) // window + 1      # MaxPool2d((window,1), pad (1,0))
        return Lp, Lout, Hp

    Lpr, Loutr, Hpr = dims(Lr)
    Lpq, Loutq, Hpq = dims(Lq)

    def prep_x(x):                                  # zero-pad seq dim, fold batch into rows
        b, l, v = x.shape
        return jnp.pad(x, ((0, 0), (1, 1), (0, 0))).reshape(b * (l + 2), v)

    def prep_w(w):                                  # (window, V, F) -> (V, window*F)
        win, v, f = w.shape
        return jnp.transpose(w, (1, 0, 2)).reshape(v, win * f)

    kernel = functools.partial(
        _fused_kernel, B=B, window=window, F=F,
        r_dims=(Lpr, Loutr, Hpr), q_dims=(Lpq, Loutq, Hpq))

    out_r, out_q = pl.pallas_call(
        kernel,
        out_shape=(jax.ShapeDtypeStruct((B * Hpr, F), jnp.float32),
                   jax.ShapeDtypeStruct((B * Hpq, F), jnp.float32)),
        in_specs=[pl.BlockSpec(memory_space=pltpu.MemorySpace.VMEM)] * 8,
        out_specs=(pl.BlockSpec(memory_space=pltpu.MemorySpace.VMEM),
                   pl.BlockSpec(memory_space=pltpu.MemorySpace.VMEM)),
    )(prep_x(response), prep_w(params["response"]["w"]),
      params["response"]["gamma"], params["response"]["beta"],
      prep_x(query), prep_w(params["query"]["w"]),
      params["query"]["gamma"], params["query"]["beta"])

    # Match torch .view(B, -1) on (B, F, Hp, 1): channel-major flatten, then concat.
    def flat(o, Hp):
        return jnp.transpose(o.reshape(B, Hp, F), (0, 2, 1)).reshape(B, F * Hp)

    return jnp.concatenate([flat(out_r, Hpr), flat(out_q, Hpq)], axis=1)


def init_params(key, query_vocab, response_vocab, window=2, num_filters=128):
    # Deterministic synthetic init.  The torch Conv2d weight (F, 1, window, V) is stored
    # as (window, V, F):  w[kh, v, f] == w_torch[f, 0, kh, v].  The conv bias is omitted:
    # the following training-mode BatchNorm cancels any per-channel constant exactly.
    def branch(k, vocab):
        k1, k2, k3 = jax.random.split(k, 3)
        return dict(
            w=0.1 * jax.random.normal(k1, (window, vocab, num_filters), jnp.float32),
            gamma=1.0 + 0.1 * jax.random.normal(k2, (1, num_filters), jnp.float32),
            beta=0.1 * jax.random.normal(k3, (1, num_filters), jnp.float32),
        )
    kq, kr = jax.random.split(key)
    return dict(query=branch(kq, query_vocab), response=branch(kr, response_vocab))


if __name__ == "__main__":
    key = jax.random.PRNGKey(0)
    kq, kr, kp = jax.random.split(key, 3)

    B = 2
    Lq, Vq = 8, 16        # query:    (B, seq_q, query_vocab_size)
    Lr, Vr = 10, 12       # response: (B, seq_r, response_vocab_size)
    num_filters = 128
    window = 2

    query = jax.random.normal(kq, (B, Lq, Vq), jnp.float32)
    response = jax.random.normal(kr, (B, Lr, Vr), jnp.float32)
    params = init_params(kp, Vq, Vr, window=window, num_filters=num_filters)

    fwd = jax.jit(functools.partial(discriminator_cnn_forward, window=window))
    out = jax.block_until_ready(fwd(query, response, params))

    hp_r = (Lr + 1) // 2 + 1
    hp_q = (Lq + 1) // 2 + 1
    assert out.shape == (B, num_filters * (hp_r + hp_q)), out.shape
    assert bool(jnp.all(jnp.isfinite(out)))
    print("KERNEL_OK")
</pallas_src>

<mosaic_0001>
module attributes {stable_mosaic.version = 11 : i64} {
  func.func @_fused_kernel(%arg0: memref<24x12xf32, #tpu.memory_space<vmem>>, %arg1: memref<12x256xf32, #tpu.memory_space<vmem>>, %arg2: memref<1x128xf32, #tpu.memory_space<vmem>>, %arg3: memref<1x128xf32, #tpu.memory_space<vmem>>, %arg4: memref<20x16xf32, #tpu.memory_space<vmem>>, %arg5: memref<16x256xf32, #tpu.memory_space<vmem>>, %arg6: memref<1x128xf32, #tpu.memory_space<vmem>>, %arg7: memref<1x128xf32, #tpu.memory_space<vmem>>, %arg8: memref<12x128xf32, #tpu.memory_space<vmem>>, %arg9: memref<10x128xf32, #tpu.memory_space<vmem>>) attributes {dimension_semantics = [], scalar_prefetch = 0 : i64, scratch_operands = 0 : i64, tpu.core_type = #tpu.core_type<tc>} {
    %c0 = arith.constant 0 : index
    %c0_0 = arith.constant 0 : index
    %0 = vector.load %arg0[%c0, %c0_0] : memref<24x12xf32, #tpu.memory_space<vmem>>, vector<24x12xf32>
    %1 = arith.truncf %0 : vector<24x12xf32> to vector<24x12xbf16>
    %c0_1 = arith.constant 0 : index
    %c0_2 = arith.constant 0 : index
    %2 = vector.load %arg1[%c0_1, %c0_2] : memref<12x256xf32, #tpu.memory_space<vmem>>, vector<12x256xf32>
    %3 = arith.truncf %2 : vector<12x256xf32> to vector<12x256xbf16>
    %cst = arith.constant dense<0.000000e+00> : vector<24x256xf32>
    %4 = tpu.matmul %1, %3, %cst {dimension_numbers = #tpu.dot_dimension_numbers<[1], [0], [0], [1], [0, 0, 1, 1], [], []>} : vector<24x12xbf16>, vector<12x256xbf16>, vector<24x256xf32> -> vector<24x256xf32>
    %cst_3 = arith.constant 0.000000e+00 : f32
    %5 = vector.broadcast %cst_3 : f32 to vector<1x128xf32>
    %6 = vector.extract_strided_slice %4 {offsets = [0, 0], sizes = [11, 128], strides = [1, 1]} : vector<24x256xf32> to vector<11x128xf32>
    %7 = vector.extract_strided_slice %4 {offsets = [1, 128], sizes = [11, 128], strides = [1, 1]} : vector<24x256xf32> to vector<11x128xf32>
    %8 = arith.addf %6, %7 : vector<11x128xf32>
    %cst_4 = arith.constant dense<0.000000e+00> : vector<128xf32>
    %9 = vector.multi_reduction <add>, %8, %cst_4 [0] : vector<11x128xf32> to vector<128xf32>
    %10 = vector.shape_cast %9 : vector<128xf32> to vector<1x128xf32>
    %11 = arith.addf %5, %10 : vector<1x128xf32>
    %12 = vector.extract_strided_slice %4 {offsets = [12, 0], sizes = [11, 128], strides = [1, 1]} : vector<24x256xf32> to vector<11x128xf32>
    %13 = vector.extract_strided_slice %4 {offsets = [13, 128], sizes = [11, 128], strides = [1, 1]} : vector<24x256xf32> to vector<11x128xf32>
    %14 = arith.addf %12, %13 : vector<11x128xf32>
    %cst_5 = arith.constant dense<0.000000e+00> : vector<128xf32>
    %15 = vector.multi_reduction <add>, %14, %cst_5 [0] : vector<11x128xf32> to vector<128xf32>
    %16 = vector.shape_cast %15 : vector<128xf32> to vector<1x128xf32>
    %17 = arith.addf %11, %16 : vector<1x128xf32>
    %cst_6 = arith.constant 2.200000e+01 : f32
    %18 = vector.broadcast %cst_6 : f32 to vector<1x128xf32>
    %19 = arith.divf %17, %18 : vector<1x128xf32>
    %cst_7 = arith.constant 0.000000e+00 : f32
    %20 = vector.broadcast %cst_7 : f32 to vector<1x128xf32>
    %21 = vector.broadcast %19 : vector<1x128xf32> to vector<11x128xf32>
    %22 = arith.subf %8, %21 : vector<11x128xf32>
    %23 = arith.mulf %22, %22 : vector<11x128xf32>
    %cst_8 = arith.constant dense<0.000000e+00> : vector<128xf32>
    %24 = vector.multi_reduction <add>, %23, %cst_8 [0] : vector<11x128xf32> to vector<128xf32>
    %25 = vector.shape_cast %24 : vector<128xf32> to vector<1x128xf32>
    %26 = arith.addf %20, %25 : vector<1x128xf32>
    %27 = vector.broadcast %19 : vector<1x128xf32> to vector<11x128xf32>
    %28 = arith.subf %14, %27 : vector<11x128xf32>
    %29 = arith.mulf %28, %28 : vector<11x128xf32>
    %cst_9 = arith.constant dense<0.000000e+00> : vector<128xf32>
    %30 = vector.multi_reduction <add>, %29, %cst_9 [0] : vector<11x128xf32> to vector<128xf32>
    %31 = vector.shape_cast %30 : vector<128xf32> to vector<1x128xf32>
    %32 = arith.addf %26, %31 : vector<1x128xf32>
    %cst_10 = arith.constant 2.200000e+01 : f32
    %33 = vector.broadcast %cst_10 : f32 to vector<1x128xf32>
    %34 = arith.divf %32, %33 : vector<1x128xf32>
    %cst_11 = arith.constant 9.99999974E-6 : f32
    %35 = vector.broadcast %cst_11 : f32 to vector<1x128xf32>
    %36 = arith.addf %34, %35 : vector<1x128xf32>
    %37 = math.rsqrt %36 : vector<1x128xf32>
    %c0_12 = arith.constant 0 : index
    %c0_13 = arith.constant 0 : index
    %38 = vector.load %arg2[%c0_12, %c0_13] : memref<1x128xf32, #tpu.memory_space<vmem>>, vector<1x128xf32>
    %39 = arith.mulf %37, %38 : vector<1x128xf32>
    %c0_14 = arith.constant 0 : index
    %c0_15 = arith.constant 0 : index
    %40 = vector.load %arg3[%c0_14, %c0_15] : memref<1x128xf32, #tpu.memory_space<vmem>>, vector<1x128xf32>
    %41 = vector.broadcast %39 : vector<1x128xf32> to vector<11x128xf32>
    %42 = arith.mulf %22, %41 : vector<11x128xf32>
    %43 = vector.broadcast %40 : vector<1x128xf32> to vector<11x128xf32>
    %44 = arith.addf %42, %43 : vector<11x128xf32>
    %45 = vector.extract_strided_slice %44 {offsets = [0, 0], sizes = [1, 128], strides = [1, 1]} : vector<11x128xf32> to vector<1x128xf32>
    %46 = vector.extract_strided_slice %44 {offsets = [1, 0], sizes = [1, 128], strides = [1, 1]} : vector<11x128xf32> to vector<1x128xf32>
    %47 = vector.extract_strided_slice %44 {offsets = [2, 0], sizes = [1, 128], strides = [1, 1]} : vector<11x128xf32> to vector<1x128xf32>
    %48 = arith.maximumf %46, %47 : vector<1x128xf32>
    %49 = vector.extract_strided_slice %44 {offsets = [3, 0], sizes = [1, 128], strides = [1, 1]} : vector<11x128xf32> to vector<1x128xf32>
    %50 = vector.extract_strided_slice %44 {offsets = [4, 0], sizes = [1, 128], strides = [1, 1]} : vector<11x128xf32> to vector<1x128xf32>
    %51 = arith.maximumf %49, %50 : vector<1x128xf32>
    %52 = vector.extract_strided_slice %44 {offsets = [5, 0], sizes = [1, 128], strides = [1, 1]} : vector<11x128xf32> to vector<1x128xf32>
    %53 = vector.extract_strided_slice %44 {offsets = [6, 0], sizes = [1, 128], strides = [1, 1]} : vector<11x128xf32> to vector<1x128xf32>
    %54 = arith.maximumf %52, %53 : vector<1x128xf32>
    %55 = vector.extract_strided_slice %44 {offsets = [7, 0], sizes = [1, 128], strides = [1, 1]} : vector<11x128xf32> to vector<1x128xf32>
    %56 = vector.extract_strided_slice %44 {offsets = [8, 0], sizes = [1, 128], strides = [1, 1]} : vector<11x128xf32> to vector<1x128xf32>
    %57 = arith.maximumf %55, %56 : vector<1x128xf32>
    %58 = vector.extract_strided_slice %44 {offsets = [9, 0], sizes = [1, 128], strides = [1, 1]} : vector<11x128xf32> to vector<1x128xf32>
    %59 = vector.extract_strided_slice %44 {offsets = [10, 0], sizes = [1, 128], strides = [1, 1]} : vector<11x128xf32> to vector<1x128xf32>
    %60 = arith.maximumf %58, %59 : vector<1x128xf32>
    %61 = vector.broadcast %39 : vector<1x128xf32> to vector<11x128xf32>
    %62 = arith.mulf %28, %61 : vector<11x128xf32>
    %63 = vector.broadcast %40 : vector<1x128xf32> to vector<11x128xf32>
    %64 = arith.addf %62, %63 : vector<11x128xf32>
    %65 = vector.extract_strided_slice %64 {offsets = [0, 0], sizes = [1, 128], strides = [1, 1]} : vector<11x128xf32> to vector<1x128xf32>
    %66 = vector.extract_strided_slice %64 {offsets = [1, 0], sizes = [1, 128], strides = [1, 1]} : vector<11x128xf32> to vector<1x128xf32>
    %67 = vector.extract_strided_slice %64 {offsets = [2, 0], sizes = [1, 128], strides = [1, 1]} : vector<11x128xf32> to vector<1x128xf32>
    %68 = arith.maximumf %66, %67 : vector<1x128xf32>
    %69 = vector.extract_strided_slice %64 {offsets = [3, 0], sizes = [1, 128], strides = [1, 1]} : vector<11x128xf32> to vector<1x128xf32>
    %70 = vector.extract_strided_slice %64 {offsets = [4, 0], sizes = [1, 128], strides = [1, 1]} : vector<11x128xf32> to vector<1x128xf32>
    %71 = arith.maximumf %69, %70 : vector<1x128xf32>
    %72 = vector.extract_strided_slice %64 {offsets = [5, 0], sizes = [1, 128], strides = [1, 1]} : vector<11x128xf32> to vector<1x128xf32>
    %73 = vector.extract_strided_slice %64 {offsets = [6, 0], sizes = [1, 128], strides = [1, 1]} : vector<11x128xf32> to vector<1x128xf32>
    %74 = arith.maximumf %72, %73 : vector<1x128xf32>
    %75 = vector.extract_strided_slice %64 {offsets = [7, 0], sizes = [1, 128], strides = [1, 1]} : vector<11x128xf32> to vector<1x128xf32>
    %76 = vector.extract_strided_slice %64 {offsets = [8, 0], sizes = [1, 128], strides = [1, 1]} : vector<11x128xf32> to vector<1x128xf32>
    %77 = arith.maximumf %75, %76 : vector<1x128xf32>
    %78 = vector.extract_strided_slice %64 {offsets = [9, 0], sizes = [1, 128], strides = [1, 1]} : vector<11x128xf32> to vector<1x128xf32>
    %79 = vector.extract_strided_slice %64 {offsets = [10, 0], sizes = [1, 128], strides = [1, 1]} : vector<11x128xf32> to vector<1x128xf32>
    %80 = arith.maximumf %78, %79 : vector<1x128xf32>
    %81 = tpu.concatenate %45, %48, %51, %54, %57, %60, %65, %68, %71, %74, %77, %80 in 0 : vector<1x128xf32>, vector<1x128xf32>, vector<1x128xf32>, vector<1x128xf32>, vector<1x128xf32>, vector<1x128xf32>, vector<1x128xf32>, vector<1x128xf32>, vector<1x128xf32>, vector<1x128xf32>, vector<1x128xf32>, vector<1x128xf32> -> vector<12x128xf32>
    %cst_16 = arith.constant 0.000000e+00 : f32
    %82 = vector.broadcast %cst_16 : f32 to vector<12x128xf32>
    %83 = arith.maximumf %81, %82 : vector<12x128xf32>
    %c0_17 = arith.constant 0 : index
    %c0_18 = arith.constant 0 : index
    %84 = vector.load %arg8[%c0_17, %c0_18] : memref<12x128xf32, #tpu.memory_space<vmem>>, vector<12x128xf32>
    tpu.vector_store %arg8[%c0_17, %c0_18], %83 {strides = array<i32>} : memref<12x128xf32, #tpu.memory_space<vmem>>, vector<12x128xf32>,
    %c0_19 = arith.constant 0 : index
    %c0_20 = arith.constant 0 : index
    %85 = vector.load %arg4[%c0_19, %c0_20] : memref<20x16xf32, #tpu.memory_space<vmem>>, vector<20x16xf32>
    %86 = arith.truncf %85 : vector<20x16xf32> to vector<20x16xbf16>
    %c0_21 = arith.constant 0 : index
    %c0_22 = arith.constant 0 : index
    %87 = vector.load %arg5[%c0_21, %c0_22] : memref<16x256xf32, #tpu.memory_space<vmem>>, vector<16x256xf32>
    %88 = arith.truncf %87 : vector<16x256xf32> to vector<16x256xbf16>
    %cst_23 = arith.constant dense<0.000000e+00> : vector<20x256xf32>
    %89 = tpu.matmul %86, %88, %cst_23 {dimension_numbers = #tpu.dot_dimension_numbers<[1], [0], [0], [1], [0, 0, 1, 1], [], []>} : vector<20x16xbf16>, vector<16x256xbf16>, vector<20x256xf32> -> vector<20x256xf32>
    %cst_24 = arith.constant 0.000000e+00 : f32
    %90 = vector.broadcast %cst_24 : f32 to vector<1x128xf32>
    %91 = vector.extract_strided_slice %89 {offsets = [0, 0], sizes = [9, 128], strides = [1, 1]} : vector<20x256xf32> to vector<9x128xf32>
    %92 = vector.extract_strided_slice %89 {offsets = [1, 128], sizes = [9, 128], strides = [1, 1]} : vector<20x256xf32> to vector<9x128xf32>
    %93 = arith.addf %91, %92 : vector<9x128xf32>
    %cst_25 = arith.constant dense<0.000000e+00> : vector<128xf32>
    %94 = vector.multi_reduction <add>, %93, %cst_25 [0] : vector<9x128xf32> to vector<128xf32>
    %95 = vector.shape_cast %94 : vector<128xf32> to vector<1x128xf32>
    %96 = arith.addf %90, %95 : vector<1x128xf32>
    %97 = vector.extract_strided_slice %89 {offsets = [10, 0], sizes = [9, 128], strides = [1, 1]} : vector<20x256xf32> to vector<9x128xf32>
    %98 = vector.extract_strided_slice %89 {offsets = [11, 128], sizes = [9, 128], strides = [1, 1]} : vector<20x256xf32> to vector<9x128xf32>
    %99 = arith.addf %97, %98 : vector<9x128xf32>
    %cst_26 = arith.constant dense<0.000000e+00> : vector<128xf32>
    %100 = vector.multi_reduction <add>, %99, %cst_26 [0] : vector<9x128xf32> to vector<128xf32>
    %101 = vector.shape_cast %100 : vector<128xf32> to vector<1x128xf32>
    %102 = arith.addf %96, %101 : vector<1x128xf32>
    %cst_27 = arith.constant 1.800000e+01 : f32
    %103 = vector.broadcast %cst_27 : f32 to vector<1x128xf32>
    %104 = arith.divf %102, %103 : vector<1x128xf32>
    %cst_28 = arith.constant 0.000000e+00 : f32
    %105 = vector.broadcast %cst_28 : f32 to vector<1x128xf32>
    %106 = vector.broadcast %104 : vector<1x128xf32> to vector<9x128xf32>
    %107 = arith.subf %93, %106 : vector<9x128xf32>
    %108 = arith.mulf %107, %107 : vector<9x128xf32>
    %cst_29 = arith.constant dense<0.000000e+00> : vector<128xf32>
    %109 = vector.multi_reduction <add>, %108, %cst_29 [0] : vector<9x128xf32> to vector<128xf32>
    %110 = vector.shape_cast %109 : vector<128xf32> to vector<1x128xf32>
    %111 = arith.addf %105, %110 : vector<1x128xf32>
    %112 = vector.broadcast %104 : vector<1x128xf32> to vector<9x128xf32>
    %113 = arith.subf %99, %112 : vector<9x128xf32>
    %114 = arith.mulf %113, %113 : vector<9x128xf32>
    %cst_30 = arith.constant dense<0.000000e+00> : vector<128xf32>
    %115 = vector.multi_reduction <add>, %114, %cst_30 [0] : vector<9x128xf32> to vector<128xf32>
    %116 = vector.shape_cast %115 : vector<128xf32> to vector<1x128xf32>
    %117 = arith.addf %111, %116 : vector<1x128xf32>
    %cst_31 = arith.constant 1.800000e+01 : f32
    %118 = vector.broadcast %cst_31 : f32 to vector<1x128xf32>
    %119 = arith.divf %117, %118 : vector<1x128xf32>
    %cst_32 = arith.constant 9.99999974E-6 : f32
    %120 = vector.broadcast %cst_32 : f32 to vector<1x128xf32>
    %121 = arith.addf %119, %120 : vector<1x128xf32>
    %122 = math.rsqrt %121 : vector<1x128xf32>
    %c0_33 = arith.constant 0 : index
    %c0_34 = arith.constant 0 : index
    %123 = vector.load %arg6[%c0_33, %c0_34] : memref<1x128xf32, #tpu.memory_space<vmem>>, vector<1x128xf32>
    %124 = arith.mulf %122, %123 : vector<1x128xf32>
    %c0_35 = arith.constant 0 : index
    %c0_36 = arith.constant 0 : index
    %125 = vector.load %arg7[%c0_35, %c0_36] : memref<1x128xf32, #tpu.memory_space<vmem>>, vector<1x128xf32>
    %126 = vector.broadcast %124 : vector<1x128xf32> to vector<9x128xf32>
    %127 = arith.mulf %107, %126 : vector<9x128xf32>
    %128 = vector.broadcast %125 : vector<1x128xf32> to vector<9x128xf32>
    %129 = arith.addf %127, %128 : vector<9x128xf32>
    %130 = vector.extract_strided_slice %129 {offsets = [0, 0], sizes = [1, 128], strides = [1, 1]} : vector<9x128xf32> to vector<1x128xf32>
    %131 = vector.extract_strided_slice %129 {offsets = [1, 0], sizes = [1, 128], strides = [1, 1]} : vector<9x128xf32> to vector<1x128xf32>
    %132 = vector.extract_strided_slice %129 {offsets = [2, 0], sizes = [1, 128], strides = [1, 1]} : vector<9x128xf32> to vector<1x128xf32>
    %133 = arith.maximumf %131, %132 : vector<1x128xf32>
    %134 = vector.extract_strided_slice %129 {offsets = [3, 0], sizes = [1, 128], strides = [1, 1]} : vector<9x128xf32> to vector<1x128xf32>
    %135 = vector.extract_strided_slice %129 {offsets = [4, 0], sizes = [1, 128], strides = [1, 1]} : vector<9x128xf32> to vector<1x128xf32>
    %136 = arith.maximumf %134, %135 : vector<1x128xf32>
    %137 = vector.extract_strided_slice %129 {offsets = [5, 0], sizes = [1, 128], strides = [1, 1]} : vector<9x128xf32> to vector<1x128xf32>
    %138 = vector.extract_strided_slice %129 {offsets = [6, 0], sizes = [1, 128], strides = [1, 1]} : vector<9x128xf32> to vector<1x128xf32>
    %139 = arith.maximumf %137, %138 : vector<1x128xf32>
    %140 = vector.extract_strided_slice %129 {offsets = [7, 0], sizes = [1, 128], strides = [1, 1]} : vector<9x128xf32> to vector<1x128xf32>
    %141 = vector.extract_strided_slice %129 {offsets = [8, 0], sizes = [1, 128], strides = [1, 1]} : vector<9x128xf32> to vector<1x128xf32>
    %142 = arith.maximumf %140, %141 : vector<1x128xf32>
    %143 = vector.broadcast %124 : vector<1x128xf32> to vector<9x128xf32>
    %144 = arith.mulf %113, %143 : vector<9x128xf32>
    %145 = vector.broadcast %125 : vector<1x128xf32> to vector<9x128xf32>
    %146 = arith.addf %144, %145 : vector<9x128xf32>
    %147 = vector.extract_strided_slice %146 {offsets = [0, 0], sizes = [1, 128], strides = [1, 1]} : vector<9x128xf32> to vector<1x128xf32>
    %148 = vector.extract_strided_slice %146 {offsets = [1, 0], sizes = [1, 128], strides = [1, 1]} : vector<9x128xf32> to vector<1x128xf32>
    %149 = vector.extract_strided_slice %146 {offsets = [2, 0], sizes = [1, 128], strides = [1, 1]} : vector<9x128xf32> to vector<1x128xf32>
    %150 = arith.maximumf %148, %149 : vector<1x128xf32>
    %151 = vector.extract_strided_slice %146 {offsets = [3, 0], sizes = [1, 128], strides = [1, 1]} : vector<9x128xf32> to vector<1x128xf32>
    %152 = vector.extract_strided_slice %146 {offsets = [4, 0], sizes = [1, 128], strides = [1, 1]} : vector<9x128xf32> to vector<1x128xf32>
    %153 = arith.maximumf %151, %152 : vector<1x128xf32>
    %154 = vector.extract_strided_slice %146 {offsets = [5, 0], sizes = [1, 128], strides = [1, 1]} : vector<9x128xf32> to vector<1x128xf32>
    %155 = vector.extract_strided_slice %146 {offsets = [6, 0], sizes = [1, 128], strides = [1, 1]} : vector<9x128xf32> to vector<1x128xf32>
    %156 = arith.maximumf %154, %155 : vector<1x128xf32>
    %157 = vector.extract_strided_slice %146 {offsets = [7, 0], sizes = [1, 128], strides = [1, 1]} : vector<9x128xf32> to vector<1x128xf32>
    %158 = vector.extract_strided_slice %146 {offsets = [8, 0], sizes = [1, 128], strides = [1, 1]} : vector<9x128xf32> to vector<1x128xf32>
    %159 = arith.maximumf %157, %158 : vector<1x128xf32>
    %160 = tpu.concatenate %130, %133, %136, %139, %142, %147, %150, %153, %156, %159 in 0 : vector<1x128xf32>, vector<1x128xf32>, vector<1x128xf32>, vector<1x128xf32>, vector<1x128xf32>, vector<1x128xf32>, vector<1x128xf32>, vector<1x128xf32>, vector<1x128xf32>, vector<1x128xf32> -> vector<10x128xf32>
    %cst_37 = arith.constant 0.000000e+00 : f32
    %161 = vector.broadcast %cst_37 : f32 to vector<10x128xf32>
    %162 = arith.maximumf %160, %161 : vector<10x128xf32>
    %c0_38 = arith.constant 0 : index
    %c0_39 = arith.constant 0 : index
    %163 = vector.load %arg9[%c0_38, %c0_39] : memref<10x128xf32, #tpu.memory_space<vmem>>, vector<10x128xf32>
    tpu.vector_store %arg9[%c0_38, %c0_39], %162 {strides = array<i32>} : memref<10x128xf32, #tpu.memory_space<vmem>>, vector<10x128xf32>,
    return
  }
}

</mosaic_0001>

<bundles_post_ra>
// kernel: discriminator_cnn_forward.1
= control target key start
LH: loop header
LB: loop body
LE: loop exit
PB: predicated region body
PF: predicated region fallthrough
CT: control target
= control target key end

     0   :  { %vm50_vm0 = vcmask 1045504   ;;  %v506_v3 = vmov 0   ;;  %vm43_vm1 = vcmask 97280   ;;  %vm281_vm2 = vcmask 130048   ;;  %s711_s1 = inlined_call_operand.vmem [shape: f32[12,256], index: 1, kind: input, shape index: {}]   ;;  %s712_s5 = inlined_call_operand.vmem [shape: f32[16,256], index: 5, kind: input, shape index: {}]   ;;  %s713_s0 = inlined_call_operand.vmem [shape: f32[24,12], index: 0, kind: input, shape index: {}]   ;;  %s714_s4 = inlined_call_operand.vmem [shape: f32[20,16], index: 4, kind: input, shape index: {}]   ;;  %s715_s2 = inlined_call_operand.vmem [shape: f32[1,128], index: 2, kind: input, shape index: {}]   ;;  %s716_s6 = inlined_call_operand.vmem [shape: f32[1,128], index: 6, kind: input, shape index: {}]   ;;  %s717_s3 = inlined_call_operand.vmem [shape: f32[1,128], index: 3, kind: input, shape index: {}]   ;;  %s718_s7 = inlined_call_operand.vmem [shape: f32[1,128], index: 7, kind: input, shape index: {}]   ;;  %s719_s8 = inlined_call_operand.vmem [shape: f32[12,128], index: 8, kind: output, shape index: {0}]   ;;  %s720_s9 = inlined_call_operand.vmem [shape: f32[10,128], index: 9, kind: output, shape index: {1}]  }
   0x1   :  { %v38_v0 = vld [vmem:[%s711_s1 + $0x8] sm:$0xff]  ;;  %v40_v1 = vld [vmem:[%s711_s1 + $0x18] sm:$0xf]  ;;  %89 = vmatprep.mubr.bf16.mxu0 %v506_v3  ;;  %320 = vmatprep.mubr.bf16.mxu1 %v506_v3  ;;  %v37_v6 = vld [vmem:[%s711_s1] sm:$0xff]  ;;  %vm110_vm3 = vcmask 1046528   ;;  %vm118_vm4 = vcmask 1042432  }
   0x2   :  { %v276_v2 = vld [vmem:[%s712_s5 + $0x8] sm:$0xff]  ;;  %v42_v4 = vpack.c.bf16 %v40_v1, %v38_v0  ;;  %v278_v5 = vld [vmem:[%s712_s5 + $0x18] sm:$0xff]  ;;  %v39_v7 = vld [vmem:[%s711_s1 + $0x10] sm:$0xf]  ;;  %vm253_vm5 = vcmask 1040384   ;;  %vm137_vm6 = vcmask 1043456  }
   0x3   :  { %v280_v8 = vpack.c.bf16 %v278_v5, %v276_v2  ;;  %v41_v9 = vpack.c.bf16 %v39_v7, %v37_v6  ;;  %v275_v10 = vld [vmem:[%s712_s5] sm:$0xff]  ;;  %v277_v11 = vld [vmem:[%s712_s5 + $0x10] sm:$0xff]  ;;  %v33_v14 = vld [vmem:[%s713_s0 + $0x8] sm:$0xff]  ;;  %vm255_vm7 = vcmask 1041408   ;;  %vm259_vm8 = vcmask 1044480  }
   0x4   :  { %v32_v12 = vld [vmem:[%s713_s0] sm:$0xff]  ;;  %494 = vmatprep.subr.msk.bf16.mxu0 %vm50_vm0, %v42_v4  ;;  %v279_v13 = vpack.c.bf16 %v277_v11, %v275_v10  ;;  %v271_v16 = vld [vmem:[%s714_s4 + $0x8] sm:$0xff]  ;;  %v34_v20 = vld [vmem:[%s713_s0 + $0x10] sm:$0xff] }
   0x5   :  { %v270_v15 = vld [vmem:[%s714_s4] sm:$0xff]  ;;  %288 = vmatprep.subr.bf16.mxu1 %v280_v8  ;;  %v52_v17 = vsel %vm50_vm0, %v41_v9, 0  ;;  %v35_v18 = vpack.c.bf16 %v33_v14, %v32_v12  ;;  %v272_v21 = vld [vmem:[%s714_s4 + $0x10] sm:$0xf]  ;;  %v36_v22 = vpack.c.bf16 %v34_v20, %v34_v20 }
   0x6   :  { %v273_v19 = vpack.c.bf16 %v271_v16, %v270_v15  ;;  %58 = vmatpush1.bf16.msra.mxu0 %v52_v17  ;;  %289 = vmatpush1.bf16.msra.mxu1 %v279_v13  ;;  %v274_v23 = vpack.c.bf16 %v272_v21, %v272_v21 }
   0x9   :  { %495 = vmatmul.mubr.msk.bf16.vlgmr.msra.gmra.mrb[0].mxu0 %vm43_vm1, %v35_v18  ;;  %498 = vmatmul.mubr.msk.bf16.vlgmr.msra.gmra.mrb[0].mxu1 %vm281_vm2, %v273_v19 }
   0xa   :  { %99 = vmatprep.mubr.bf16.mxu0 %v506_v3  ;;  %330 = vmatprep.mubr.bf16.mxu1 %v506_v3 }
  0x11   :  { %496 = vmatmul.mubr.msk.bf16.gmra.mrb[4].mxu0 %vm43_vm1, %v36_v22  ;;  %499 = vmatmul.mubr.msk.bf16.gmra.mrb[4].mxu1 %vm281_vm2, %v274_v23 }
  0xdc   :  { %v91_v24 = vpop.f32.mrb[0].mxu0  ;;  %v322_v25 = vpop.f32.mrb[0].mxu1 }
  0xdd   :  { %v93_v26 = vpop.f32.mrb[1].mxu0  ;;  %v324_v27 = vpop.f32.mrb[1].mxu1 }
  0xde   :  { %v95_v28 = vpop.f32.mrb[2].mxu0  ;;  %v326_v29 = vpop.f32.mrb[2].mxu1  ;;  %v111_v32 = vrot.slane %v93_v26, 1  ;;  %v341_v33 = vrot.slane %v324_v27, 1 }
  0xdf   :  { %v97_v30 = vpop.f32.mrb[3].mxu0  ;;  %v328_v31 = vpop.f32.mrb[3].mxu1 }
  0xe0   :  { %v112_v34 = vrot.slane %v97_v30, 1  ;;  %v342_v35 = vrot.slane %v328_v31, 1 }
  0xe2   :  { %v113_v36 = vsel %vm110_vm3, %v111_v32, %v112_v34  ;;  %v602_v37 = vadd.f32 %v112_v34, %v95_v28  ;;  %v343_v38 = vsel %vm110_vm3, %v341_v33, %v342_v35  ;;  %v605_v39 = vadd.f32 %v342_v35, %v326_v29 }
  0xe3   :  { %v116_v40 = vadd.f32 %v113_v36, %v91_v24  ;;  %v607_v41 = vadd.f32 %v343_v38, %v322_v25 }
  0xe4   :  { %v119_v42 = vsel %vm118_vm4, %v602_v37, 0.0  ;;  %v348_v43 = vsel %vm253_vm5, %v605_v39, 0.0  ;;  %v101_v44 = vpop.f32.mrb[4].mxu0  ;;  %v332_v45 = vpop.f32.mrb[4].mxu1 }
  0xe5   :  { %v120_v46 = vadd.f32 %v119_v42, %v116_v40  ;;  %v349_v47 = vadd.f32 %v348_v43, %v607_v41  ;;  %v103_v48 = vpop.f32.mrb[5].mxu0  ;;  %v334_v49 = vpop.f32.mrb[5].mxu1 }
  0xe6   :  { %v129_v50 = vrot.slane %v103_v48, 1  ;;  %v358_v51 = vrot.slane %v334_v49, 1  ;;  %v105_v52 = vpop.f32.mrb[6].mxu0  ;;  %v336_v53 = vpop.f32.mrb[6].mxu1 }
  0xe7   :  { %v121_v54 = vrot.slane %v120_v46, 4  ;;  %v350_v55 = vrot.slane %v349_v47, 4  ;;  %v106_v56 = vpop.f32.mrb[7].mxu0  ;;  %v337_v57 = vpop.f32.mrb[7].mxu1 }
  0xe8   :  { %v130_v58 = vsel %vm110_vm3, %v112_v34, %v129_v50  ;;  %v134_v59 = vadd.f32 %v129_v50, %v101_v44  ;;  %v359_v60 = vsel %vm110_vm3, %v342_v35, %v358_v51  ;;  %v363_v61 = vadd.f32 %v358_v51, %v332_v45 }
  0xe9   :  { %v133_v62 = vadd.f32 %v130_v58, %v95_v28  ;;  %v362_v63 = vadd.f32 %v359_v60, %v326_v29  ;;  %v122_v0 = vadd.f32 %v121_v54, %v120_v46  ;;  %v351_v1 = vadd.f32 %v350_v55, %v349_v47 }
  0xea   :  { %v139_v2 = vrot.slane %v134_v59, 4  ;;  %v367_v3 = vrot.slane %v363_v61, 2 }
  0xeb   :  { %v138_v4 = vrot.slane %v133_v62, 4  ;;  %v366_v5 = vrot.slane %v362_v63, 2  ;;  %v123_v10 = vrot.slane %v122_v0, 2  ;;  %v352_v11 = vrot.slane %v351_v1, 2 }
  0xec   :  { %v143_v6 = vsel %vm118_vm4, %v139_v2, 0.0  ;;  %v371_v7 = vsel %vm253_vm5, %v367_v3, 0.0 }
  0xed   :  { %v140_v8 = vsel %vm137_vm6, %v138_v4, %v139_v2  ;;  %v368_v9 = vsel %vm50_vm0, %v366_v5, %v367_v3  ;;  %v124_v16 = vadd.f32 %v123_v10, %v122_v0  ;;  %v353_v17 = vadd.f32 %v352_v11, %v351_v1 }
  0xee   :  { %v144_v12 = vadd.f32 %v143_v6, %v140_v8  ;;  %v372_v13 = vadd.f32 %v371_v7, %v368_v9 }
  0xef   :  { %v125_v22 = vrot.slane %v124_v16, 1  ;;  %v354_v23 = vrot.slane %v353_v17, 1 }
  0xf0   :  { %v145_v14 = vrot.slane %v144_v12, 4  ;;  %v373_v15 = vrot.slane %v372_v13, 4 }
  0xf1   :  { %v126_v28 = vadd.f32 %v125_v22, %v124_v16  ;;  %v355_v29 = vadd.f32 %v354_v23, %v353_v17 }
  0xf2   :  { %v146_v18 = vadd.f32 %v145_v14, %v144_v12  ;;  %v374_v19 = vadd.f32 %v373_v15, %v372_v13 }
  0xf4   :  { %v147_v20 = vrot.slane %v146_v18, 2  ;;  %v375_v21 = vrot.slane %v374_v19, 2 }
  0xf6   :  { %v148_v24 = vadd.f32 %v147_v20, %v146_v18  ;;  %v376_v25 = vadd.f32 %v375_v21, %v374_v19 }
  0xf8   :  { %v149_v26 = vrot.slane %v148_v24, 1  ;;  %v377_v27 = vrot.slane %v376_v25, 1 }
  0xfa   :  { %v150_v30 = vadd.f32 %v149_v26, %v148_v24  ;;  %v378_v31 = vadd.f32 %v377_v27, %v376_v25 }
  0xfc   :  { %v151_v32 = vadd.f32 %v150_v30, %v126_v28  ;;  %v379_v33 = vadd.f32 %v378_v31, %v355_v29 }
  0xfe   :  { %v153_v34 = vmul.f32 0.045454547, %v151_v32  ;;  %v381_v35 = vmul.f32 0.055555556, %v379_v33  ;;  %v193_v32 = vlaneseq }
 0x100   :  { %v620_v36 = vsub.f32 %v116_v40, %v153_v34  ;;  %v623_v38 = vsub.f32 %v602_v37, %v153_v34  ;;  %v625_v42 = vsub.f32 %v133_v62, %v153_v34  ;;  %v627_v43 = vsub.f32 %v134_v59, %v153_v34  ;;  %v190_v34 = vld [vmem:[%s715_s2] sm:$0x1] }
 0x101   :  { %v630_v44 = vsub.f32 %v607_v41, %v381_v35  ;;  %v633_v45 = vsub.f32 %v605_v39, %v381_v35  ;;  %v635_v46 = vsub.f32 %v362_v63, %v381_v35  ;;  %v637_v47 = vsub.f32 %v363_v61, %v381_v35 }
 0x102   :  { %v156_v40 = vmul.f32 %v620_v36, %v620_v36  ;;  %v157_v37 = vmul.f32 %v623_v38, %v623_v38  ;;  %v169_v48 = vmul.f32 %v625_v42, %v625_v42  ;;  %v170_v41 = vmul.f32 %v627_v43, %v627_v43 }
 0x103   :  { %v384_v39 = vmul.f32 %v630_v44, %v630_v44  ;;  %v385_v49 = vmul.f32 %v633_v45, %v633_v45  ;;  %v397_v50 = vmul.f32 %v635_v46, %v635_v46  ;;  %v398_v51 = vmul.f32 %v637_v47, %v637_v47 }
 0x104   :  { %v158_v52 = vsel %vm118_vm4, %v157_v37, 0.0  ;;  %v173_v53 = vrot.slane %v169_v48, 4  ;;  %v174_v54 = vrot.slane %v170_v41, 4  ;;  %v194_v33 = vshrl.u32 %v193_v32, 7 }
 0x105   :  { %v159_v55 = vadd.f32 %v158_v52, %v156_v40  ;;  %v386_v56 = vsel %vm253_vm5, %v385_v49, 0.0  ;;  %v401_v57 = vrot.slane %v397_v50, 2  ;;  %v402_v58 = vrot.slane %v398_v51, 2  ;;  %v418_v40 = vld [vmem:[%s716_s6] sm:$0x1] }
 0x106   :  { %v175_v59 = vsel %vm137_vm6, %v173_v53, %v174_v54  ;;  %v178_v60 = vsel %vm118_vm4, %v174_v54, 0.0  ;;  %v387_v61 = vadd.f32 %v386_v56, %v384_v39  ;;  %v195_v35 = vsub.s32 0, %v194_v33  ;;  %v497_v50 = vld [vmem:[%s717_s3] ss:$0 sm:$0xff] }
 0x107   :  { %v160_v62 = vrot.slane %v159_v55, 4  ;;  %v179_v63 = vadd.f32 %v178_v60, %v175_v59  ;;  %v403_v0 = vsel %vm50_vm0, %v401_v57, %v402_v58  ;;  %v406_v1 = vsel %vm253_vm5, %v402_v58, 0.0  ;;  %v500_v56 = vld [vmem:[%s718_s7] ss:$0 sm:$0xff] }
 0x108   :  { %v388_v2 = vrot.slane %v387_v61, 4  ;;  %v407_v3 = vadd.f32 %v406_v1, %v403_v0 }
 0x109   :  { %v161_v4 = vadd.f32 %v160_v62, %v159_v55  ;;  %v180_v5 = vrot.slane %v179_v63, 4 }
 0x10a   :  { %v389_v6 = vadd.f32 %v388_v2, %v387_v61  ;;  %v408_v7 = vrot.slane %v407_v3, 4 }
 0x10b   :  { %v162_v8 = vrot.slane %v161_v4, 2  ;;  %v181_v9 = vadd.f32 %v180_v5, %v179_v63 }
 0x10c   :  { %v390_v10 = vrot.slane %v389_v6, 2  ;;  %v409_v11 = vadd.f32 %v408_v7, %v407_v3 }
 0x10d   :  { %v163_v12 = vadd.f32 %v162_v8, %v161_v4  ;;  %v182_v13 = vrot.slane %v181_v9, 2 }
 0x10e   :  { %v391_v14 = vadd.f32 %v390_v10, %v389_v6  ;;  %v410_v15 = vrot.slane %v409_v11, 2 }
 0x10f   :  { %v164_v16 = vrot.slane %v163_v12, 1  ;;  %v183_v17 = vadd.f32 %v182_v13, %v181_v9 }
 0x110   :  { %v392_v18 = vrot.slane %v391_v14, 1  ;;  %v411_v19 = vadd.f32 %v410_v15, %v409_v11 }
 0x111   :  { %v184_v20 = vrot.slane %v183_v17, 1  ;;  %v165_v22 = vadd.f32 %v164_v16, %v163_v12 }
 0x112   :  { %v412_v21 = vrot.slane %v411_v19, 1  ;;  %v393_v24 = vadd.f32 %v392_v18, %v391_v14 }
 0x113   :  { %v185_v23 = vadd.f32 %v184_v20, %v183_v17 }
 0x114   :  { %v413_v25 = vadd.f32 %v412_v21, %v411_v19 }
 0x115   :  { %v186_v26 = vadd.f32 %v185_v23, %v165_v22 }
 0x116   :  { %v414_v27 = vadd.f32 %v413_v25, %v393_v24 }
 0x117   :  { %v187_v28 = vmul.f32 0.045454547, %v186_v26 }
 0x118   :  { %v415_v29 = vmul.f32 0.055555556, %v414_v27 }
 0x119   :  { %v188_v30 = vadd.f32 1e-05, %v187_v28 }
 0x11a   :  { %v416_v31 = vadd.f32 1e-05, %v415_v29 }
 0x11b   :  { %502 = vrsqrt.f32 %v188_v30 }
 0x11c   :  { %504 = vrsqrt.f32 %v416_v31 }
 0x125   :  { %v503_v37 = vpop.eup %502 }
 0x126   :  { %v505_v48 = vpop.eup %504  ;;  %v191_v41 = vmul.f32 %v503_v37, %v190_v34 }
 0x127   :  { %v419_v39 = vmul.f32 %v505_v48, %v418_v40 }
 0x128   :  { %v196_v49 = vrot.slane %v191_v41, %v195_v35 }
 0x129   :  { %v424_v51 = vrot.slane %v419_v39, %v195_v35 }
 0x12a   :  { %v197_v52 = vmul.f32 %v196_v49, %v620_v36  ;;  %v198_v53 = vmul.f32 %v196_v49, %v623_v38  ;;  %v216_v54 = vmul.f32 %v196_v49, %v625_v42  ;;  %v217_v55 = vmul.f32 %v196_v49, %v627_v43 }
 0x12b   :  { %v425_v57 = vmul.f32 %v424_v51, %v630_v44  ;;  %v426_v58 = vmul.f32 %v424_v51, %v633_v45  ;;  %v443_v59 = vmul.f32 %v424_v51, %v635_v46  ;;  %v444_v60 = vmul.f32 %v424_v51, %v637_v47 }
 0x12c   :  { %v205_v61 = vadd.f32 %v497_v50, %v197_v52  ;;  %v206_v36 = vadd.f32 %v497_v50, %v198_v53  ;;  %v218_v62 = vadd.f32 %v497_v50, %v216_v54  ;;  %v219_v38 = vadd.f32 %v497_v50, %v217_v55 }
 0x12d   :  { %v433_v63 = vadd.f32 %v500_v56, %v425_v57  ;;  %v434_v42 = vadd.f32 %v500_v56, %v426_v58  ;;  %v445_v44 = vadd.f32 %v500_v56, %v443_v59  ;;  %v446_v46 = vadd.f32 %v500_v56, %v444_v60 }
 0x12e   :  { %v208_v0 = vrot.slane %v205_v61, 1  ;;  %v212_v43 = vrot.slane %v206_v36, 1  ;;  %v221_v1 = vrot.slane %v218_v62, 1  ;;  %v225_v2 = vrot.slane %v219_v38, 1 }
 0x12f   :  { %v436_v3 = vrot.slane %v433_v63, 1  ;;  %v440_v4 = vrot.slane %v434_v42, 1  ;;  %v240_v13 = vrot.slane %v218_v62, 6  ;;  %v448_v16 = vrot.slane %v445_v44, 1 }
 0x130   :  { %v210_v5 = vmax.f32 %v205_v61, %v208_v0  ;;  %v214_v45 = vmax.f32 %v205_v61, %v212_v43  ;;  %v215_v6 = vmax.f32 %v206_v36, %v212_v43  ;;  %v223_v7 = vmax.f32 %v218_v62, %v221_v1 }
 0x131   :  { %v227_v47 = vmax.f32 %v218_v62, %v225_v2  ;;  %v228_v8 = vmax.f32 %v219_v38, %v225_v2  ;;  %v442_v9 = vmax.f32 %v433_v63, %v440_v4  ;;  %v438_v12 = vmax.f32 %v433_v63, %v436_v3 }
 0x132   :  { %v230_v10 = vrot.slane %v210_v5, 1  ;;  %v232_v11 = vrot.slane %v210_v5, 2  ;;  %v235_v17 = vrot.slane %v214_v45, 3  ;;  %v238_v18 = vrot.slane %v215_v6, 4 }
 0x133   :  { %v246_v14 = vrot.slane %v227_v47, 7  ;;  %v249_v15 = vrot.slane %v228_v8, 1  ;;  %v254_v19 = vsel %vm253_vm5, %v205_v61, %v210_v5  ;;  %v452_v20 = vrot.slane %v446_v46, 1 }
 0x134   :  { %v243_v21 = vrot.slane %v223_v7, 6  ;;  %v251_v22 = vrot.slane %v228_v8, 2  ;;  %v256_v23 = vsel %vm255_vm7, %v254_v19, %v230_v10  ;;  %v457_v28 = vrot.slane %v438_v12, 1 }
 0x135   :  { %v263_v24 = vsel %vm253_vm5, %v246_v14, %v228_v8  ;;  %v257_v25 = vsel %vm118_vm4, %v256_v23, %v232_v11  ;;  %v454_v27 = vmax.f32 %v445_v44, %v452_v20  ;;  %v450_v31 = vmax.f32 %v445_v44, %v448_v16 }
 0x136   :  { %v264_v26 = vsel %vm255_vm7, %v263_v24, %v249_v15  ;;  %v258_v29 = vsel %vm137_vm6, %v257_v25, %v235_v17  ;;  %v459_v32 = vrot.slane %v438_v12, 2  ;;  %v455_v35 = vmax.f32 %v446_v46, %v452_v20 }
 0x137   :  { %v265_v30 = vsel %vm118_vm4, %v264_v26, %v251_v22  ;;  %v260_v33 = vsel %vm259_vm8, %v258_v29, %v238_v18  ;;  %v472_v40 = vrot.slane %v454_v27, 7  ;;  %v474_v48 = vsel %vm253_vm5, %v433_v63, %v438_v12 }
 0x138   :  { %v267_v34 = vmax.f32 %v265_v30, 0.0  ;;  %v261_v37 = vsel %vm50_vm0, %v260_v33, %v240_v13  ;;  %v462_v39 = vrot.slane %v442_v9, 3  ;;  %v475_v49 = vsel %vm255_vm7, %v474_v48, %v457_v28 }
 0x139   :  { %v262_v41 = vsel %vm110_vm3, %v261_v37, %v243_v21  ;;  %v481_v50 = vsel %vm253_vm5, %v472_v40, %v455_v35  ;;  %v464_v52 = vrot.slane %v445_v44, 5  ;;  %v476_v53 = vsel %vm118_vm4, %v475_v49, %v459_v32 }
 0x13a   :  { %269 = vst [vmem:[%s719_s8 + $0x8] sm:$0xf] %v267_v34  ;;  %v266_v51 = vmax.f32 %v262_v41, 0.0  ;;  %v483_v54 = vmax.f32 %v481_v50, 0.0  ;;  %v467_v55 = vrot.slane %v450_v31, 5  ;;  %v477_v56 = vsel %vm137_vm6, %v476_v53, %v462_v39 }
 0x13b   :  { %v469_v57 = vrot.slane %v450_v31, 6  ;;  %v478_v58 = vsel %vm259_vm8, %v477_v56, %v464_v52 }
 0x13c   :  { %268 = vst [vmem:[%s719_s8] sm:$0xff] %v266_v51  ;;  %485 = vst [vmem:[%s720_s9 + $0x8] sm:$0x3] %v483_v54  ;;  %v479_v59 = vsel %vm50_vm0, %v478_v58, %v467_v55 }
 0x13d   :  { %v480_v60 = vsel %vm110_vm3, %v479_v59, %v469_v57 }
 0x13e   :  { %v482_v61 = vmax.f32 %v480_v60, 0.0 }
 0x140   :  { %484 = vst [vmem:[%s720_s9] sm:$0xff] %v482_v61 }

</bundles_post_ra>
